<compile_context>
chip_gen: v7x
topology: tpu7x:2x2x1
jax: 0.10.0
libtpu: 0.0.40
codegen_flags: <defaults>
</compile_context>

<pallas_src>
import math

import jax
import jax.numpy as jnp
from jax.experimental import pallas as pl
from jax.experimental.pallas import tpu as pltpu


def _round_up(x, m):
    return ((x + m - 1) // m) * m


def _sublane_rows(dtype):
    # Minimum second-minor block granule per dtype (f32: 8, bf16: 16, int8/fp8: 32).
    return {4: 8, 2: 16, 1: 32}.get(jnp.dtype(dtype).itemsize, 8)


def _choose_pack_factor(feat, d_model, itemsize, max_weight_bytes, max_pack):
    """Smallest P with (P*d_model) % 128 == 0, grown (x2) until the packed output
    width is a multiple of 256 and the packed input width >= 128, under a weight
    byte budget.  Returns None if even the minimal packing is too large
    (irregular d_model) -> caller falls back to output-column padding."""
    p = 128 // math.gcd(d_model, 128)

    def fits(q):
        return q <= max_pack and (q * feat) * (q * d_model) * itemsize <= max_weight_bytes

    if not fits(p):
        return None
    while ((p * d_model) % 256 != 0 or p * feat < 128) and fits(2 * p):
        p *= 2
    return p


def prepare_embeddings_params(weight, bias, d_model, *, compute_dtype=None,
                              max_weight_bytes=4 * 1024 * 1024, max_pack=16):
    """One-time parameter prep (do NOT call per forward).

    weight: torch nn.Linear layout, shape (d_model, in_features)
    bias:   shape (d_model,)
    Folds sqrt(d_model) into both and builds the block-diagonal packed weight.
    """
    d_out, feat = weight.shape
    assert d_out == d_model
    scale = float(math.sqrt(d_model))
    w_fd = jnp.asarray(weight).T * scale                 # (F, D), scale folded in
    b_sc = jnp.asarray(bias, dtype=jnp.float32) * scale  # bias kept in f32
    w_dtype = jnp.dtype(compute_dtype) if compute_dtype is not None else w_fd.dtype

    p = _choose_pack_factor(feat, d_model, w_dtype.itemsize, max_weight_bytes, max_pack)
    if p is None:
        # Irregular d_model (e.g. 100): pad output columns up to a multiple of 128 so
        # stores stay unmasked full-lane vst; the wrapper slices the pad columns off.
        p = 1
        n_cols = _round_up(d_model, 128)
        w_blk = jnp.zeros((feat, n_cols), w_fd.dtype).at[:, :d_model].set(w_fd)
        b_blk = jnp.zeros((1, n_cols), jnp.float32).at[0, :d_model].set(b_sc)
    else:
        n_cols = p * d_model
        w_blk = jnp.kron(jnp.eye(p, dtype=w_fd.dtype), w_fd) if p > 1 else w_fd
        b_blk = jnp.tile(b_sc, p).reshape(1, n_cols)

    # TODO(synk): for very large F*d_model (weight >> VMEM) add K/N tiling; not needed
    # for this module's embedding-sized weights, which stay VMEM-resident.
    return {
        "w": w_blk.astype(w_dtype),   # (Kp, Np) block-diagonal, pre-scaled
        "b": b_blk,                   # (1, Np) f32, pre-scaled
        "P": p,
        "F": feat,
        "D": d_model,
    }


def _embeddings_kernel(x_ref, w_ref, b_ref, o_ref):
    # x_ref: (TM, Kp)  w_ref: (Kp, Np)  b_ref: (1, Np) f32  o_ref: (TM, Np)
    x = x_ref[...]
    w = w_ref[...]
    if x.dtype != w.dtype:            # trace-time branch (mixed-precision input)
        x = x.astype(w.dtype)
    acc = jnp.dot(x, w, preferred_element_type=jnp.float32)
    o_ref[...] = (acc + b_ref[...]).astype(o_ref.dtype)


def embeddings_forward(x, params, *, tile_rows=1024, out_dtype=None):
    """(x @ W + b) * sqrt(d_model) with W/b pre-packed by prepare_embeddings_params.

    x: (..., F).  Fast path requires prod(leading dims) % params['P'] == 0
    (pure reshapes, zero extra HBM traffic); otherwise a small tail pad is paid.
    """
    w, b = params["w"], params["b"]
    pack, d_model = params["P"], params["D"]
    k_p, n_p = w.shape
    *lead, feat = x.shape
    assert feat == params["F"], "feature dim mismatch"
    out_dtype = jnp.dtype(out_dtype) if out_dtype is not None else jnp.dtype(x.dtype)

    m = math.prod(lead)
    x2d = x.reshape(m, feat)

    sub = max(_sublane_rows(x.dtype), _sublane_rows(out_dtype))
    if m % pack:
        # Slow path (one extra HBM copy): keep batch*seq a multiple of P to avoid it.
        m_pad = _round_up(m, pack * sub)
        x2d = jnp.pad(x2d, ((0, m_pad - m), (0, 0)))
    else:
        m_pad = m
    rows = m_pad // pack
    x_packed = x2d.reshape(rows, k_p)      # free: row-major layouts are identical

    # --- row tiling: balanced, dtype-aware, VMEM-budget capped -----------------
    x_isz = jnp.dtype(x.dtype).itemsize
    o_isz = out_dtype.itemsize
    w_isz = w.dtype.itemsize
    stream_row_bytes = 2 * (k_p * x_isz + n_p * o_isz)        # double-buffered x/out
    resident_bytes = 2 * k_p * n_p * w_isz + 2 * n_p * 4      # resident weight + bias
    budget = 20 * 1024 * 1024                                 # of the 32 MiB scoped VMEM
    cap = max(sub, (budget - resident_bytes) // stream_row_bytes)
    trows = max(sub, min(tile_rows, cap))

    n_tiles = pl.cdiv(rows, trows)
    if n_tiles == 1 and rows >= 2 * sub:
        n_tiles = 2        # let the "parallel" axis shard across both v7x TensorCores
    if n_tiles == 1:
        tm = rows          # full-extent block: always a legal block shape
    else:
        tm = _round_up(pl.cdiv(rows, n_tiles), sub)
    grid_rows = pl.cdiv(rows, tm)   # ragged last tile handled by Pallas OOB masking

    cost = pl.CostEstimate(
        flops=2 * rows * k_p * n_p,
        transcendentals=0,
        bytes_accessed=(rows * k_p * x_isz + k_p * n_p * w_isz
                        + n_p * 4 + rows * n_p * o_isz),
    )

    out_packed = pl.pallas_call(
        _embeddings_kernel,
        out_shape=jax.ShapeDtypeStruct((rows, n_p), out_dtype),
        grid_spec=pltpu.PrefetchScalarGridSpec(
            num_scalar_prefetch=0,
            grid=(grid_rows,),
            in_specs=[
                pl.BlockSpec((tm, k_p), lambda i: (i, 0)),    # streamed row tiles
                pl.BlockSpec((k_p, n_p), lambda i: (0, 0)),   # resident packed weight
                pl.BlockSpec((1, n_p), lambda i: (0, 0)),     # resident bias
            ],
            out_specs=pl.BlockSpec((tm, n_p), lambda i: (i, 0)),
        ),
        compiler_params=pltpu.CompilerParams(
            dimension_semantics=("parallel",),      # megacore-shard rows on v7x
            vmem_limit_bytes=32 * 1024 * 1024,      # above v5e's 16 MiB scoped default
        ),
        cost_estimate=cost,
    )(x_packed, w, b)

    if pack == 1:
        out2d = out_packed if n_p == d_model else out_packed[:, :d_model]
    else:
        out2d = out_packed.reshape(rows * pack, d_model)   # free reshape
    if m_pad != m:
        out2d = out2d[:m]
    return out2d.reshape(*lead, d_model)


if __name__ == "__main__":
    batch, seq = 2, 16
    input_dim, num_sources = 32, 1
    d_model = 64
    feat = input_dim * num_sources

    key = jax.random.PRNGKey(0)
    kx, kw, kb = jax.random.split(key, 3)
    limit = 1.0 / math.sqrt(feat)
    # Deterministic "nn.Linear"-style params (torch layout: weight is (d_model, feat)).
    w_torch = jax.random.uniform(kw, (d_model, feat), jnp.float32, -limit, limit)
    bias = jax.random.uniform(kb, (d_model,), jnp.float32, -limit, limit)

    params = prepare_embeddings_params(w_torch, bias, d_model)   # once, not per call
    scale = math.sqrt(d_model)

    def ref_fn(xi):
        y = xi.reshape(-1, feat) @ w_torch.T + bias
        return (y * scale).reshape(*xi.shape[:-1], d_model)

    # 1) fast path: M % P == 0, single full-extent tile, no pad/slice anywhere.
    x1 = jax.random.normal(kx, (batch, seq, feat), jnp.float32)
    o1 = jax.block_until_ready(embeddings_forward(x1, params))
    assert o1.shape == (batch, seq, d_model)
    assert jnp.allclose(o1, ref_fn(x1), atol=2e-3, rtol=2e-3)

    # 2) ragged tail: M not a multiple of the pack factor (small pad/slice fallback).
    x2 = jax.random.normal(jax.random.PRNGKey(1), (3, 5, feat), jnp.float32)
    o2 = jax.block_until_ready(embeddings_forward(x2, params))
    assert jnp.allclose(o2, ref_fn(x2), atol=2e-3, rtol=2e-3)

    # 3) multi-tile grid with a ragged last tile (Pallas OOB masking, no jnp.pad).
    x3 = jax.random.normal(jax.random.PRNGKey(2), (5, 32, feat), jnp.float32)
    o3 = jax.block_until_ready(embeddings_forward(x3, params))
    assert jnp.allclose(o3, ref_fn(x3), atol=2e-3, rtol=2e-3)

    # 4) explicit multi-tile grid via a small tile_rows.
    x4 = jax.random.normal(jax.random.PRNGKey(3), (4, 64, feat), jnp.float32)
    o4 = jax.block_until_ready(embeddings_forward(x4, params, tile_rows=32))
    assert jnp.allclose(o4, ref_fn(x4), atol=2e-3, rtol=2e-3)

    # 5) bf16 streaming path (halves HBM traffic; f32 MXU accumulation).
    params_bf16 = prepare_embeddings_params(w_torch, bias, d_model,
                                            compute_dtype=jnp.bfloat16)
    o5 = jax.block_until_ready(
        embeddings_forward(x1.astype(jnp.bfloat16), params_bf16,
                           out_dtype=jnp.float32))
    assert jnp.allclose(o5, ref_fn(x1), atol=0.5, rtol=5e-2)

    print("KERNEL_OK")
</pallas_src>

<mosaic_0001>
module attributes {stable_mosaic.version = 11 : i64} {
  func.func @_embeddings_kernel(%arg0: i32, %arg1: memref<8x128xf32, #tpu.memory_space<vmem>>, %arg2: memref<128x256xf32, #tpu.memory_space<vmem>>, %arg3: memref<1x256xf32, #tpu.memory_space<vmem>>, %arg4: memref<8x256xf32, #tpu.memory_space<vmem>>) attributes {dimension_semantics = [#tpu.dimension_semantics<parallel>], iteration_bounds = array<i64: 1>, scalar_prefetch = 0 : i64, scratch_operands = 0 : i64, tpu.core_type = #tpu.core_type<tc>, window_params = [{transform_indices = @transform_0, window_bounds = array<i64: 8, 128>}, {pipeline_mode = #tpu.pipeline_mode<synchronous>, transform_indices = @transform_1, window_bounds = array<i64: 128, 256>}, {pipeline_mode = #tpu.pipeline_mode<synchronous>, transform_indices = @transform_2, window_bounds = array<i64: 1, 256>}, {transform_indices = @transform_3, window_bounds = array<i64: 8, 256>}]} {
    %c0 = arith.constant 0 : index
    %c0_0 = arith.constant 0 : index
    %0 = vector.load %arg1[%c0, %c0_0] : memref<8x128xf32, #tpu.memory_space<vmem>>, vector<8x128xf32>
    %c0_1 = arith.constant 0 : index
    %c0_2 = arith.constant 0 : index
    %1 = vector.load %arg2[%c0_1, %c0_2] : memref<128x256xf32, #tpu.memory_space<vmem>>, vector<128x256xf32>
    %cst = arith.constant dense<0.000000e+00> : vector<8x256xf32>
    %2 = tpu.matmul %0, %1, %cst {dimension_numbers = #tpu.dot_dimension_numbers<[1], [0], [0], [1], [0, 0, 1, 1], [], []>} : vector<8x128xf32>, vector<128x256xf32>, vector<8x256xf32> -> vector<8x256xf32>
    %c0_3 = arith.constant 0 : index
    %c0_4 = arith.constant 0 : index
    %3 = vector.load %arg3[%c0_3, %c0_4] : memref<1x256xf32, #tpu.memory_space<vmem>>, vector<1x256xf32>
    %4 = vector.broadcast %3 : vector<1x256xf32> to vector<8x256xf32>
    %5 = arith.addf %2, %4 : vector<8x256xf32>
    %c0_5 = arith.constant 0 : index
    %c0_6 = arith.constant 0 : index
    %6 = vector.load %arg4[%c0_5, %c0_6] : memref<8x256xf32, #tpu.memory_space<vmem>>, vector<8x256xf32>
    tpu.vector_store %arg4[%c0_5, %c0_6], %5 {strides = array<i32>} : memref<8x256xf32, #tpu.memory_space<vmem>>, vector<8x256xf32>,
    return
  }
  func.func @transform_0(%arg0: i32) -> (i32, i32) {
    %c0_i32 = arith.constant 0 : i32
    %c0_i32_0 = arith.constant 0 : i32
    return %arg0, %c0_i32 : i32, i32
  }
  func.func @transform_1(%arg0: i32) -> (i32, i32) {
    %c0_i32 = arith.constant 0 : i32
    %c0_i32_0 = arith.constant 0 : i32
    %c0_i32_1 = arith.constant 0 : i32
    return %c0_i32, %c0_i32_0 : i32, i32
  }
  func.func @transform_2(%arg0: i32) -> (i32, i32) {
    %c0_i32 = arith.constant 0 : i32
    %c0_i32_0 = arith.constant 0 : i32
    %c0_i32_1 = arith.constant 0 : i32
    return %c0_i32, %c0_i32_0 : i32, i32
  }
  func.func @transform_3(%arg0: i32) -> (i32, i32) {
    %c0_i32 = arith.constant 0 : i32
    %c0_i32_0 = arith.constant 0 : i32
    return %arg0, %c0_i32 : i32, i32
  }
}

</mosaic_0001>

<bundles_post_ra>
// kernel: tpu_custom_call.1
= control target key start
LH: loop header
LB: loop body
LE: loop exit
PB: predicated region body
PF: predicated region fallthrough
CT: control target
= control target key end

     0   :  { %8 = vsyncpa [#allocation3], 0  ;;  %s357_s0 = inlined_call_operand.hbm [shape: f32[8,128], index: 0, kind: input, shape index: {}]   ;;  %s358_s1 = inlined_call_operand.hbm [shape: f32[128,256], index: 1, kind: input, shape index: {}]   ;;  %s359_s2 = inlined_call_operand.vmem [shape: f32[1,256], index: 2, kind: input, shape index: {}]   ;;  %s360_s3 = inlined_call_operand.hbm [shape: f32[8,256], index: 3, kind: output, shape index: {}]  }
   0x1   :  { %9 = vsyncpa [#allocation6], 0 }
   0x2   :  { %10 = vsyncpa [#allocation4], 0  ;;  %s285_s12 = smov [#allocation2]   ;;  %s286_s14 = smov [#allocation5]  }
   0x3   :  { %s17_s13 = sshll.u32 %s285_s12, 4  ;;  %s26_s15 = sshll.u32 %s286_s14, 4  ;;  %s18_s13 = int_to_ptr.vmem [resolvable:$true] %s17_s13  ;;  %s311_s15 = int_to_ptr.vmem [resolvable:$true] %s26_s15 }
   0x4   :  { %s213_s18 = scalar_lea.hbm %s357_s0, 128 }
   0x5   :  { %p214_p0 = scmp.ne.s32.totalorder %s357_s0, %s213_s18  ;;  %p217_p1 = scmp.lt.u32.totalorder %s213_s18, %s357_s0 }
   0x7   :  { %p219_p2 = pnand %p217_p1, %p214_p0 }
   0x9   :  { %222 = shalt.err (!%p219_p2)
}
   0xa   :  { %s223_s23 = scalar_lea.vmem %s18_s13, 128  ;;  %p228_p4 = scmp.lt.s32.totalorder %s18_s13, %s18_s13 }
   0xb   :  { %p224_p3 = scmp.ne.s32.totalorder %s18_s13, %s223_s23  ;;  %p229_p5 = scmp.lt.s32.totalorder %s223_s23, %s223_s23 }
   0xd   :  { %p230_p6 = por %p229_p5, %p228_p4 }
   0xf   :  { %p231_p7 = pnand %p230_p6, %p224_p3 }
  0x11   :  { %234 = shalt.err (!%p231_p7)
}
  0x12   :  { %20 = dma.hbm_to_vmem [thread:$0]  %s357_s0, 128, %s18_s13, [#allocation3]  }
  0x13   :  { %s235_s28 = scalar_lea.hbm %s358_s1, 4096 }
  0x14   :  { %p236_p8 = scmp.ne.s32.totalorder %s358_s1, %s235_s28  ;;  %p239_p9 = scmp.lt.u32.totalorder %s235_s28, %s358_s1 }
  0x16   :  { %p241_p10 = pnand %p239_p9, %p236_p8 }
  0x18   :  { %244 = shalt.err (!%p241_p10)
}
  0x19   :  { %s245_s6 = scalar_lea.vmem %s311_s15, 4096  ;;  %p250_p12 = scmp.lt.s32.totalorder %s311_s15, %s311_s15 }
  0x1a   :  { %p246_p11 = scmp.ne.s32.totalorder %s311_s15, %s245_s6  ;;  %p251_p13 = scmp.lt.s32.totalorder %s245_s6, %s245_s6 }
  0x1c   :  { %p252_p0 = por %p251_p13, %p250_p12 }
  0x1e   :  { %p253_p1 = pnand %p252_p0, %p246_p11 }
  0x20   :  { %256 = shalt.err (!%p253_p1)
}
  0x21   :  { %s287_s0 = smov 256   ;;  %s288_s7 = smov 16  }
  0x22   :  { %32 = dma.hbm_to_vmem [thread:$0]  %s358_s1, 4096, %s311_s15, [#allocation6], %s287_s0, %s287_s0, %s288_s7  }
  0x23   :  { %279 = dma.done.wait [#allocation3], 128  }
  0x24   :  { %280 = vsyncadd [#allocation3], 4294967168 }
  0x25   :  { %281 = dma.done.wait [#allocation6], 4096  }
  0x26   :  { %282 = vsyncadd [#allocation6], 4294963200  ;;  %v289_v0 = vmov 0.0   ;;  %v43_v1 = vld [vmem:[#allocation5 + $0x8] sm:$0xff]  ;;  %v45_v2 = vld [vmem:[#allocation5 + $0x18] sm:$0xff]  ;;  %v76_v50 = vlaneseq  ;;  %s290_s11 = smov [#allocation7]  }
  0x27   :  { %150 = vmatprep.mubr.f32.mxu0 %v289_v0  ;;  %v42_v3 = vld [vmem:[#allocation5] sm:$0xff]  ;;  %v175_v4 = vpack.c.bf16 %v45_v2, %v43_v1  ;;  %v44_v5 = vld [vmem:[#allocation5 + $0x10] sm:$0xff]  ;;  %v47_v6 = vld [vmem:[#allocation5 + $0x28] sm:$0xff]  ;;  %s165_s12 = sshll.u32 %s290_s11, 4  ;;  %s166_s12 = int_to_ptr.vmem [resolvable:$true] %s165_s12 }
  0x28   :  { %v49_v7 = vld [vmem:[#allocation5 + $0x38] sm:$0xff]  ;;  %v177_v8 = vpack.c.bf16 %v44_v5, %v42_v3  ;;  %v46_v10 = vld [vmem:[#allocation5 + $0x20] sm:$0xff]  ;;  %v48_v11 = vld [vmem:[#allocation5 + $0x30] sm:$0xff]  ;;  %v77_v51 = vshrl.u32 %v76_v50, 7  ;;  %s257_s13 = scalar_lea.vmem %s166_s12, 256  ;;  %p262_p3 = scmp.lt.s32.totalorder %s166_s12, %s166_s12 }
  0x29   :  { %v179_v9 = vpack.c.bf16 %v49_v7, %v47_v6  ;;  %v51_v12 = vld [vmem:[#allocation5 + $0x48] sm:$0xff]  ;;  %176 = vmatprep.subr.bf16.mxu0 %v175_v4  ;;  %v53_v13 = vld [vmem:[#allocation5 + $0x58] sm:$0xff]  ;;  %v181_v14 = vpack.c.bf16 %v48_v11, %v46_v10  ;;  %v50_v16 = vld [vmem:[#allocation5 + $0x40] sm:$0xff]  ;;  %p258_p2 = scmp.ne.s32.totalorder %s166_s12, %s257_s13  ;;  %p263_p4 = scmp.lt.s32.totalorder %s257_s13, %s257_s13 }
  0x2a   :  { %178 = vmatpush1.bf16.msra.mxu0 %v177_v8  ;;  %v183_v15 = vpack.c.bf16 %v53_v13, %v51_v12  ;;  %v52_v17 = vld [vmem:[#allocation5 + $0x50] sm:$0xff]  ;;  %v55_v18 = vld [vmem:[#allocation5 + $0x68] sm:$0xff]  ;;  %v57_v19 = vld [vmem:[#allocation5 + $0x78] sm:$0xff]  ;;  %v78_v52 = vsub.s32 0, %v77_v51  ;;  %v82_v54 = vsub.s32 1, %v77_v51 }
  0x2b   :  { %180 = vmatprep.subr.bf16.mxu0 %v179_v9  ;;  %v185_v20 = vpack.c.bf16 %v52_v17, %v50_v16  ;;  %v187_v21 = vpack.c.bf16 %v57_v19, %v55_v18  ;;  %v54_v22 = vld [vmem:[#allocation5 + $0x60] sm:$0xff]  ;;  %v56_v23 = vld [vmem:[#allocation5 + $0x70] sm:$0xff]  ;;  %v59_v24 = vld [vmem:[#allocation5 + $0x88] sm:$0xff]  ;;  %p264_p5 = por %p263_p4, %p262_p3 }
  0x2c   :  { %v61_v25 = vld [vmem:[#allocation5 + $0x98] sm:$0xff]  ;;  %v189_v26 = vpack.c.bf16 %v56_v23, %v54_v22  ;;  %v58_v28 = vld [vmem:[#allocation5 + $0x80] sm:$0xff]  ;;  %v60_v29 = vld [vmem:[#allocation5 + $0x90] sm:$0xff] }
  0x2d   :  { %v191_v27 = vpack.c.bf16 %v61_v25, %v59_v24  ;;  %v63_v30 = vld [vmem:[#allocation5 + $0xa8] sm:$0xff]  ;;  %v65_v31 = vld [vmem:[#allocation5 + $0xb8] sm:$0xff]  ;;  %v193_v32 = vpack.c.bf16 %v60_v29, %v58_v28  ;;  %v62_v34 = vld [vmem:[#allocation5 + $0xa0] sm:$0xff]  ;;  %p265_p6 = pnand %p264_p5, %p258_p2 }
  0x2e   :  { %182 = vmatpush1.bf16.msra.mxu0 %v181_v14  ;;  %v195_v33 = vpack.c.bf16 %v65_v31, %v63_v30  ;;  %v64_v35 = vld [vmem:[#allocation5 + $0xb0] sm:$0xff]  ;;  %v67_v36 = vld [vmem:[#allocation5 + $0xc8] sm:$0xff]  ;;  %v69_v37 = vld [vmem:[#allocation5 + $0xd8] sm:$0xff] }
  0x2f   :  { %184 = vmatprep.subr.bf16.mxu0 %v183_v15  ;;  %v197_v38 = vpack.c.bf16 %v64_v35, %v62_v34  ;;  %v199_v39 = vpack.c.bf16 %v69_v37, %v67_v36  ;;  %v66_v40 = vld [vmem:[#allocation5 + $0xc0] sm:$0xff]  ;;  %v68_v41 = vld [vmem:[#allocation5 + $0xd0] sm:$0xff]  ;;  %v71_v42 = vld [vmem:[#allocation5 + $0xe8] sm:$0xff] }
  0x30   :  { %v73_v43 = vld [vmem:[#allocation5 + $0xf8] sm:$0xff]  ;;  %v201_v44 = vpack.c.bf16 %v68_v41, %v66_v40  ;;  %v70_v46 = vld [vmem:[#allocation5 + $0xe0] sm:$0xff]  ;;  %v72_v47 = vld [vmem:[#allocation5 + $0xf0] sm:$0xff] }
  0x31   :  { %v203_v45 = vpack.c.bf16 %v73_v43, %v71_v42  ;;  %v205_v48 = vpack.c.bf16 %v72_v47, %v70_v46  ;;  %v41_v49 = vld [vmem:[#allocation2] sm:$0xff] }
  0x32   :  { %186 = vmatpush1.bf16.msra.mxu0 %v185_v20  ;;  %v74_v53 = vld [vmem:[%s359_s2] sm:$0x3] }
  0x33   :  { %188 = vmatprep.subr.bf16.mxu0 %v187_v21  ;;  %v79_v55 = vrot.slane %v74_v53, %v78_v52  ;;  %v83_v56 = vrot.slane %v74_v53, %v82_v54 }
  0x36   :  { %190 = vmatpush1.bf16.msra.mxu0 %v189_v26 }
  0x37   :  { %192 = vmatprep.subr.bf16.mxu0 %v191_v27 }
  0x3a   :  { %194 = vmatpush1.bf16.msra.mxu0 %v193_v32 }
  0x3b   :  { %196 = vmatprep.subr.bf16.mxu0 %v195_v33 }
  0x3e   :  { %198 = vmatpush1.bf16.msra.mxu0 %v197_v38 }
  0x3f   :  { %200 = vmatprep.subr.bf16.mxu0 %v199_v39 }
  0x42   :  { %202 = vmatpush1.bf16.msra.mxu0 %v201_v44 }
  0x43   :  { %204 = vmatprep.subr.bf16.mxu0 %v203_v45 }
  0x46   :  { %206 = vmatpush1.bf16.msra.mxu0 %v205_v48 }
  0x49   :  { %151 = vmatmul.mubr.f32.vlgmr.msra.gmra.mrb[0].mxu0 %v41_v49 }
 0x11c   :  { %v152_v57 = vpop.f32.mrb[0].mxu0 }
 0x11d   :  { %v153_v58 = vadd.f32 %v152_v57, %v79_v55  ;;  %v154_v59 = vpop.f32.mrb[1].mxu0 }
 0x11e   :  { %v155_v60 = vadd.f32 %v154_v59, %v83_v56 }
 0x11f   :  { %157 = vst [vmem:[#allocation7] sm:$0xff] %v153_v58 }
 0x120   :  { %158 = vst [vmem:[#allocation7 + $0x8] sm:$0xff] %v155_v60 }
 0x121   :  { %268 = shalt.err (!%p265_p6)
}
 0x122   :  { %s269_s15 = scalar_lea.hbm %s360_s3, 256 }
 0x123   :  { %p270_p7 = scmp.ne.s32.totalorder %s360_s3, %s269_s15  ;;  %p273_p8 = scmp.lt.u32.totalorder %s269_s15, %s360_s3 }
 0x125   :  { %p275_p9 = pnand %p273_p8, %p270_p7 }
 0x127   :  { %278 = shalt.err (!%p275_p9)
}
 0x128   :  { %168 = dma.vmem_to_hbm [thread:$0]  %s166_s12, 256, %s360_s3, [#allocation4]  }
 0x129   :  { %283 = dma.done.wait [#allocation4], 256  }
 0x12a   :  { %284 = vsyncadd [#allocation4], 4294967040 }
 0x12b   :  { %172 = vsyncpa [#allocation3], 1 }
 0x12c   :  { %173 = vsyncpa [#allocation6], 1 }
 0x12d   :  { %174 = vsyncpa [#allocation4], 1 }

</bundles_post_ra>
